<compile_context>
chip_gen: v7x
topology: tpu7x:2x2x1
jax: 0.10.0
libtpu: 0.0.40
codegen_flags: <defaults>
</compile_context>

<pallas_src>
import functools

import jax
import jax.numpy as jnp
from jax import lax
from jax.experimental import pallas as pl
from jax.experimental.pallas import tpu as pltpu


def mlp_kernel(x_ref, w1_ref, b1_ref, w2_ref, b2_ref, w3_ref, b3_ref, o_ref,
               *, chunk, n_chunks, compute_dtype):
    # x_ref: (tile_n, D)  natural layout (batch on sublanes of x, lanes of h/o)
    # w1: (64, D)  b1: (64, 1)   w2: (32, 64)  b2: (32, 1)
    # w3: (32, 1) (= W3^T)       b3: (1, 1)
    # o_ref: (1, tile_n)  — lane-dense output
    w1 = w1_ref[...].astype(compute_dtype)
    w2 = w2_ref[...].astype(compute_dtype)
    b1 = b1_ref[...]
    b2 = b2_ref[...]
    w3 = w3_ref[...]
    b3 = b3_ref[...]

    def body(c, carry):
        start = pl.multiple_of(c * chunk, chunk)
        x_c = x_ref[pl.ds(start, chunk), :].astype(compute_dtype)      # (chunk, D)

        # Layer 1: contract over D on both operands (== W1 @ x_c^T); Mosaic
        # handles the transposed moving operand, no explicit relayout needed.
        h1 = lax.dot_general(
            w1, x_c, dimension_numbers=(((1,), (1,)), ((), ())),
            preferred_element_type=jnp.float32)                        # (64, chunk)
        h1 = jnp.maximum(h1 + b1, 0.0)

        h2 = jnp.dot(w2, h1.astype(compute_dtype),
                     preferred_element_type=jnp.float32)               # (32, chunk)
        h2 = jnp.maximum(h2 + b2, 0.0)

        # Final layer: lane-wise multiply + sublane (XLU) reduce.
        out_c = jnp.sum(h2 * w3, axis=0, keepdims=True) + b3           # (1, chunk)
        o_ref[:, pl.ds(start, chunk)] = out_c.astype(o_ref.dtype)
        return carry

    # Unrolled chunk loop keeps each chunk's h1/h2 in vregs (no VMEM round-trip).
    lax.fori_loop(0, n_chunks, body, 0, unroll=True)


def mlp_forward(x, params, *, tile_n=16384, use_bf16_mxu=False):
    """x: (N, D) f32.  params in PyTorch (out_features, in_features) layout.

    Returns (N, 1), identical semantics to the PyTorch module.
    """
    n, d = x.shape
    w1, b1, w2, b2, w3c, b3 = params
    h1 = w1.shape[0]
    h2 = w2.shape[0]
    do = b3.shape[0]

    # ---- batch tile sizing --------------------------------------------------
    assert tile_n % 128 == 0, "batch tile must be a multiple of 128 (lane width)"
    # (a) keep >= 2 grid steps whenever the batch spans more than one 128-lane
    #     group, so the "parallel" axis can shard across v7x's two TensorCores.
    tile_n = min(tile_n, max(128, pl.cdiv(n, 2 * 128) * 128))
    # (b) keep the double-buffered x tile inside a conservative VMEM budget
    #     (safe on v7x's 64 MiB as well as v5e/v6e).
    x_vmem_budget = 8 * 1024 * 1024
    tile_cap = max(128, (x_vmem_budget // (2 * 4 * d)) // 128 * 128)
    tile_n = min(tile_n, tile_cap)

    grid = (pl.cdiv(n, tile_n),)   # no padding of x: partial trailing block is OK

    # Lane-chunk size for the in-kernel vreg-resident loop.
    if tile_n % 512 == 0:
        chunk = 512
    elif tile_n % 256 == 0:
        chunk = 256
    else:
        chunk = 128
    n_chunks = tile_n // chunk

    compute_dtype = jnp.bfloat16 if use_bf16_mxu else jnp.float32
    kernel = functools.partial(mlp_kernel, chunk=chunk, n_chunks=n_chunks,
                               compute_dtype=compute_dtype)

    rep = lambda i: (0, 0)  # weights/biases: same (resident) block every step

    out_t = pl.pallas_call(
        kernel,
        out_shape=jax.ShapeDtypeStruct((do, n), x.dtype),
        grid_spec=pltpu.PrefetchScalarGridSpec(
            num_scalar_prefetch=0,
            grid=grid,
            in_specs=[
                pl.BlockSpec((tile_n, d), lambda i: (i, 0)),   # x tile, natural (N, D)
                pl.BlockSpec((h1, d), rep),                    # W1   (64, D)
                pl.BlockSpec((h1, 1), rep),                    # b1   (64, 1)
                pl.BlockSpec((h2, h1), rep),                   # W2   (32, 64)
                pl.BlockSpec((h2, 1), rep),                    # b2   (32, 1)
                pl.BlockSpec((h2, do), rep),                   # W3^T (32, 1)
                pl.BlockSpec((do, 1), rep),                    # b3   (1, 1)
            ],
            out_specs=pl.BlockSpec((do, tile_n), lambda i: (0, i)),
        ),
        compiler_params=pltpu.CompilerParams(
            dimension_semantics=("parallel",),
            vmem_limit_bytes=32 * 1024 * 1024),
    )(x, w1, b1, w2, b2, w3c, b3)

    return out_t.T  # (1, N) -> (N, 1): pure layout plumbing, no extra HBM pass of x


def init_params(key, d_in, h1=64, h2=32, d_out=1, dtype=jnp.float32):
    """PyTorch-style init: U(-1/sqrt(fan_in), 1/sqrt(fan_in)).

    Weights stored in PyTorch (out_features, in_features) layout; biases as
    column vectors (out_features, 1); W3 stored transposed as (h2, 1).
    """
    ks = jax.random.split(key, 6)

    def uniform(k, shape, fan_in):
        bound = 1.0 / jnp.sqrt(jnp.asarray(fan_in, dtype))
        return jax.random.uniform(k, shape, dtype, -bound, bound)

    w1 = uniform(ks[0], (h1, d_in), d_in)     # (64, D)
    b1 = uniform(ks[1], (h1, 1), d_in)        # (64, 1)
    w2 = uniform(ks[2], (h2, h1), h1)         # (32, 64)
    b2 = uniform(ks[3], (h2, 1), h1)          # (32, 1)
    w3c = uniform(ks[4], (h2, d_out), h2)     # (32, 1)  == W3^T
    b3 = uniform(ks[5], (d_out, 1), h2)       # (1, 1)
    return (w1, b1, w2, b2, w3c, b3)


def mlp_reference(x, params):
    w1, b1, w2, b2, w3c, b3 = params
    h = jnp.maximum(x @ w1.T + b1.T, 0.0)
    h = jnp.maximum(h @ w2.T + b2.T, 0.0)
    return h @ w3c + b3.T


if __name__ == "__main__":
    key = jax.random.PRNGKey(0)
    k_x, k_p = jax.random.split(key)

    # Non-multiple-of-tile batch exercises the unpadded partial trailing block,
    # and the tile clamp yields grid=(2,) so the "parallel" axis is exercised too.
    N, D = 300, 16
    x = jax.random.normal(k_x, (N, D), dtype=jnp.float32)
    params = init_params(k_p, D)

    out = mlp_forward(x, params)  # f32 MXU path: bit-tight vs. reference
    out = jax.block_until_ready(out)

    ref = mlp_reference(x, params)
    assert out.shape == (N, 1)
    assert jnp.allclose(out, ref, atol=1e-5, rtol=1e-5)

    print("KERNEL_OK")
</pallas_src>

<mosaic_0001>
module attributes {stable_mosaic.version = 11 : i64} {
  func.func @mlp_kernel(%arg0: i32, %arg1: memref<256x16xf32, #tpu.memory_space<vmem>>, %arg2: memref<64x16xf32, #tpu.memory_space<vmem>>, %arg3: memref<64x1xf32, #tpu.memory_space<vmem>>, %arg4: memref<32x64xf32, #tpu.memory_space<vmem>>, %arg5: memref<32x1xf32, #tpu.memory_space<vmem>>, %arg6: memref<32x1xf32, #tpu.memory_space<vmem>>, %arg7: memref<1x1xf32, #tpu.memory_space<vmem>>, %arg8: memref<1x256xf32, #tpu.memory_space<vmem>>) attributes {dimension_semantics = [#tpu.dimension_semantics<parallel>], iteration_bounds = array<i64: 2>, scalar_prefetch = 0 : i64, scratch_operands = 0 : i64, tpu.core_type = #tpu.core_type<tc>, window_params = [{transform_indices = @transform_0, window_bounds = array<i64: 256, 16>}, {pipeline_mode = #tpu.pipeline_mode<synchronous>, transform_indices = @transform_1, window_bounds = array<i64: 64, 16>}, {pipeline_mode = #tpu.pipeline_mode<synchronous>, transform_indices = @transform_2, window_bounds = array<i64: 64, 1>}, {pipeline_mode = #tpu.pipeline_mode<synchronous>, transform_indices = @transform_3, window_bounds = array<i64: 32, 64>}, {pipeline_mode = #tpu.pipeline_mode<synchronous>, transform_indices = @transform_4, window_bounds = array<i64: 32, 1>}, {pipeline_mode = #tpu.pipeline_mode<synchronous>, transform_indices = @transform_5, window_bounds = array<i64: 32, 1>}, {pipeline_mode = #tpu.pipeline_mode<synchronous>, transform_indices = @transform_6, window_bounds = array<i64: 1, 1>}, {transform_indices = @transform_7, window_bounds = array<i64: 1, 256>}]} {
    %c0 = arith.constant 0 : index
    %c0_0 = arith.constant 0 : index
    %0 = vector.load %arg2[%c0, %c0_0] : memref<64x16xf32, #tpu.memory_space<vmem>>, vector<64x16xf32>
    %c0_1 = arith.constant 0 : index
    %c0_2 = arith.constant 0 : index
    %1 = vector.load %arg4[%c0_1, %c0_2] : memref<32x64xf32, #tpu.memory_space<vmem>>, vector<32x64xf32>
    %c0_3 = arith.constant 0 : index
    %c0_4 = arith.constant 0 : index
    %2 = vector.load %arg3[%c0_3, %c0_4] : memref<64x1xf32, #tpu.memory_space<vmem>>, vector<64x1xf32>
    %c0_5 = arith.constant 0 : index
    %c0_6 = arith.constant 0 : index
    %3 = vector.load %arg5[%c0_5, %c0_6] : memref<32x1xf32, #tpu.memory_space<vmem>>, vector<32x1xf32>
    %c0_7 = arith.constant 0 : index
    %c0_8 = arith.constant 0 : index
    %4 = vector.load %arg6[%c0_7, %c0_8] : memref<32x1xf32, #tpu.memory_space<vmem>>, vector<32x1xf32>
    %c0_9 = arith.constant 0 : index
    %c0_10 = arith.constant 0 : index
    %5 = vector.load %arg7[%c0_9, %c0_10] : memref<1x1xf32, #tpu.memory_space<vmem>>, vector<1x1xf32>
    %c0_i32 = arith.constant 0 : i32
    %c256_i32 = arith.constant 256 : i32
    %6 = arith.muli %c0_i32, %c256_i32 : i32
    %7 = tpu.assume_multiple %6, 256 : i32
    %8 = arith.index_cast %7 : i32 to index
    %c0_11 = arith.constant 0 : index
    %9 = vector.load %arg1[%8, %c0_11] : memref<256x16xf32, #tpu.memory_space<vmem>>, vector<256x16xf32>
    %cst = arith.constant dense<0.000000e+00> : vector<64x256xf32>
    %10 = tpu.matmul %0, %9, %cst {dimension_numbers = #tpu.dot_dimension_numbers<[1], [1], [0], [0], [0, 0, 1, 0], [], []>} : vector<64x16xf32>, vector<256x16xf32>, vector<64x256xf32> -> vector<64x256xf32>
    %11 = vector.broadcast %2 : vector<64x1xf32> to vector<64x256xf32>
    %12 = arith.addf %10, %11 : vector<64x256xf32>
    %cst_12 = arith.constant 0.000000e+00 : f32
    %13 = vector.broadcast %cst_12 : f32 to vector<64x256xf32>
    %14 = arith.maximumf %12, %13 : vector<64x256xf32>
    %cst_13 = arith.constant dense<0.000000e+00> : vector<32x256xf32>
    %15 = tpu.matmul %1, %14, %cst_13 {dimension_numbers = #tpu.dot_dimension_numbers<[1], [0], [0], [1], [0, 0, 1, 1], [], []>} : vector<32x64xf32>, vector<64x256xf32>, vector<32x256xf32> -> vector<32x256xf32>
    %16 = vector.broadcast %3 : vector<32x1xf32> to vector<32x256xf32>
    %17 = arith.addf %15, %16 : vector<32x256xf32>
    %cst_14 = arith.constant 0.000000e+00 : f32
    %18 = vector.broadcast %cst_14 : f32 to vector<32x256xf32>
    %19 = arith.maximumf %17, %18 : vector<32x256xf32>
    %20 = vector.broadcast %4 : vector<32x1xf32> to vector<32x256xf32>
    %21 = arith.mulf %19, %20 : vector<32x256xf32>
    %cst_15 = arith.constant dense<0.000000e+00> : vector<256xf32>
    %22 = vector.multi_reduction <add>, %21, %cst_15 [0] : vector<32x256xf32> to vector<256xf32>
    %23 = vector.shape_cast %22 : vector<256xf32> to vector<1x256xf32>
    %24 = vector.broadcast %5 : vector<1x1xf32> to vector<1x256xf32>
    %25 = arith.addf %23, %24 : vector<1x256xf32>
    %c0_16 = arith.constant 0 : index
    %26 = arith.index_cast %7 : i32 to index
    %27 = vector.load %arg8[%c0_16, %26] : memref<1x256xf32, #tpu.memory_space<vmem>>, vector<1x256xf32>
    tpu.vector_store %arg8[%c0_16, %26], %25 {strides = array<i32>} : memref<1x256xf32, #tpu.memory_space<vmem>>, vector<1x256xf32>,
    %c1_i32 = arith.constant 1 : i32
    return
  }
  func.func @transform_0(%arg0: i32) -> (i32, i32) {
    %c0_i32 = arith.constant 0 : i32
    %c0_i32_0 = arith.constant 0 : i32
    return %arg0, %c0_i32 : i32, i32
  }
  func.func @transform_1(%arg0: i32) -> (i32, i32) {
    %c0_i32 = arith.constant 0 : i32
    %c0_i32_0 = arith.constant 0 : i32
    %c0_i32_1 = arith.constant 0 : i32
    return %c0_i32, %c0_i32_0 : i32, i32
  }
  func.func @transform_2(%arg0: i32) -> (i32, i32) {
    %c0_i32 = arith.constant 0 : i32
    %c0_i32_0 = arith.constant 0 : i32
    %c0_i32_1 = arith.constant 0 : i32
    return %c0_i32, %c0_i32_0 : i32, i32
  }
  func.func @transform_3(%arg0: i32) -> (i32, i32) {
    %c0_i32 = arith.constant 0 : i32
    %c0_i32_0 = arith.constant 0 : i32
    %c0_i32_1 = arith.constant 0 : i32
    return %c0_i32, %c0_i32_0 : i32, i32
  }
  func.func @transform_4(%arg0: i32) -> (i32, i32) {
    %c0_i32 = arith.constant 0 : i32
    %c0_i32_0 = arith.constant 0 : i32
    %c0_i32_1 = arith.constant 0 : i32
    return %c0_i32, %c0_i32_0 : i32, i32
  }
  func.func @transform_5(%arg0: i32) -> (i32, i32) {
    %c0_i32 = arith.constant 0 : i32
    %c0_i32_0 = arith.constant 0 : i32
    %c0_i32_1 = arith.constant 0 : i32
    return %c0_i32, %c0_i32_0 : i32, i32
  }
  func.func @transform_6(%arg0: i32) -> (i32, i32) {
    %c0_i32 = arith.constant 0 : i32
    %c0_i32_0 = arith.constant 0 : i32
    %c0_i32_1 = arith.constant 0 : i32
    return %c0_i32, %c0_i32_0 : i32, i32
  }
  func.func @transform_7(%arg0: i32) -> (i32, i32) {
    %c0_i32 = arith.constant 0 : i32
    %c0_i32_0 = arith.constant 0 : i32
    return %c0_i32, %arg0 : i32, i32
  }
}

</mosaic_0001>

<bundles_post_ra>
// kernel: tpu_custom_call.1
= control target key start
LH: loop header
LB: loop body
LE: loop exit
PB: predicated region body
PF: predicated region fallthrough
CT: control target
= control target key end

     0   :  { %s1566_s0 = inlined_call_operand.vmem [shape: f32[300,16], index: 0, kind: input, shape index: {}]   ;;  %s1567_s1 = inlined_call_operand.vmem [shape: f32[64,16], index: 1, kind: input, shape index: {}]   ;;  %s1568_s2 = inlined_call_operand.vmem [shape: f32[64,1], index: 2, kind: input, shape index: {}]   ;;  %s1569_s3 = inlined_call_operand.vmem [shape: f32[32,64], index: 3, kind: input, shape index: {}]   ;;  %s1570_s4 = inlined_call_operand.vmem [shape: f32[32,1], index: 4, kind: input, shape index: {}]   ;;  %s1571_s5 = inlined_call_operand.vmem [shape: f32[32,1], index: 5, kind: input, shape index: {}]   ;;  %s1572_s6 = inlined_call_operand.<no memory space> [shape: f32[1,1], index: 6, kind: input, shape index: {}]   ;;  %s1573_s7 = inlined_call_operand.hbm [shape: f32[1,300], index: 7, kind: output, shape index: {}]  }
   0x1   :  { %v12_v0 = vstv %s1572_s6 }
   0x2   :  { %13 = vst [vmem:[#allocation2] sm:$0x1] %v12_v0 }
   0x3   :  { %14 = vsyncpa [#allocation4], 0 }
   0x4   :  { %16 = vsyncpa [#allocation4 + $0x1], 0  ;;  %s1271_s26 = smov 0   ;;  %s1273_s27 = smov 0  }
   0x5   :  { %s1275_s28 = smov 0   ;;  %s1277_s29 = smov 0  }
   0x6 LB: > { %s1292_s6 = sadd.s32 4294967295, %s1222_s29   ;;  %s946_s30 = sadd.s32 4294967294, %s1222_s29   ;;  %s1222_s29 = sphi %s1277_s29, %s1581_s29   ;;  %s1218_s28 = sphi %s1275_s28, %s1580_s28   ;;  %s1214_s27 = sphi %s1273_s27, %s1579_s27   ;;  %s1210_s26 = sphi %s1271_s26, %s1578_s26  }
   0x7   : > { %s1296_s8 = sadd.s32 1, %s1222_s29   ;;  %s181_s9 = sadd.s32 1, %s1218_s28 }
   0x8   : > { %s178_s10 = ssub.s32 %s1222_s29, %s1296_s8  ;;  %p191_p0 = scmp.ne.s32.totalorder %s1218_s28, %s1214_s27 }
   0x9   : > { %p179_p1 = scmp.eq.s32.totalorder %s178_s10, 0  ;;  %p192_p2 = scmp.eq.s32.totalorder %s1292_s6, 1 }
   0xa   : > { %p197_p3 = scmp.ne.s32.totalorder %s1214_s27, %s1210_s26  ;;  %p198_p4 = scmp.eq.s32.totalorder %s946_s30, 1 }
   0xb   : > { %s1307_s11 = scalar_select %p179_p1, %s1218_s28, %s181_s9  }
   0xc   : > { %p1309_p5 = por %p192_p2, %p191_p0  ;;  %p1313_p6 = por %p198_p4, %p197_p3 }
   0xd   : > { %p949_p7 = scmp.ge.s32.totalorder %s1222_s29, 1  ;;  %p251_p8 = scmp.lt.s32.totalorder %s1222_s29, 3 }
   0xf   : > { %p252_p9 = pnand %p949_p7, %p251_p8 }
  0x10   : > { %s1320_s14 = sshll.u32 (!%p252_p9), %s1292_s6, 5  ;;  %vm407_vm0 = vcmask (!%p252_p9), 130048   ;;  %v1325_v1 = vld [vmem:[%s1567_s1] sm:$0xff] (!%p252_p9)  ;;  %v1224_v2 = vmov (!%p252_p9), 0   ;;  %v320_v4 = vld [vmem:[%s1568_s2 + $0x10] sm:$0xff] (!%p252_p9)  ;;  %v319_v5 = vld [vmem:[%s1568_s2 + $0x8] sm:$0xff] (!%p252_p9) }
  0x11   : > { %255 = sbr.rel (%p252_p9) target bundleno = 627 (0x273), region = 48  ;;  %p292_p10 = scmp.lt.s32.totalorder (!%p252_p9), %s1320_s14, 37  ;;  %1037 = vmatprep.mubr.msk.f32.mxu0 (!%p252_p9), %vm407_vm0, %v1325_v1  ;;  %1158 = vset.pattern.permute.xlu0 (!%p252_p9), %v1224_v2  ;;  %v318_v3 = vld [vmem:[%s1568_s2] sm:$0xff] (!%p252_p9)  ;;  %v321_v6 = vld [vmem:[%s1568_s2 + $0x18] sm:$0xff] (!%p252_p9)  ;;  %vm1350_vm1 = vmpackc.low (!%p252_p9), %vm407_vm0, %vm407_vm0  ;;  %vm677_vm2 = vcmask (!%p252_p9), 523264  }
  0x12   : > { %1159 = vset.pattern.permute.xlu1 (!%p252_p9), %v1224_v2  ;;  %369 = vperm.xlu0 (!%p252_p9), %1158, %v318_v3   ;;  %v322_v17 = vld [vmem:[%s1568_s2 + $0x20] sm:$0xff] (!%p252_p9)  ;;  %v323_v18 = vld [vmem:[%s1568_s2 + $0x28] sm:$0xff] (!%p252_p9)  ;;  %v324_v23 = vld [vmem:[%s1568_s2 + $0x30] sm:$0xff] (!%p252_p9)  ;;  %s284_s21 = sand.u32 (!%p252_p9), 1, %s1214_s27  }
  0x13   : > { %379 = vperm.xlu1 (!%p252_p9), %1159, %v320_v4   ;;  %v325_v24 = vld [vmem:[%s1568_s2 + $0x38] sm:$0xff] (!%p252_p9)  ;;  %v326_v27 = vld [vmem:[%s1570_s4] sm:$0xff] (!%p252_p9)  ;;  %v327_v28 = vld [vmem:[%s1570_s4 + $0x8] sm:$0xff] (!%p252_p9)  ;;  %s1512_s24 = scalar_lea.sflag (!%p252_p9), [#allocation4], %s284_s21 }
  0x14   : > { %v328_v33 = vld [vmem:[%s1570_s4 + $0x10] sm:$0xff] (!%p252_p9)  ;;  %v329_v34 = vld [vmem:[%s1570_s4 + $0x18] sm:$0xff] (!%p252_p9)  ;;  %v330_v37 = vld [vmem:[%s1571_s5] sm:$0xff] (!%p252_p9) }
  0x15   : > { %v331_v38 = vld [vmem:[%s1571_s5 + $0x8] sm:$0xff] (!%p252_p9)  ;;  %v332_v43 = vld [vmem:[%s1571_s5 + $0x10] sm:$0xff] (!%p252_p9)  ;;  %v333_v44 = vld [vmem:[%s1571_s5 + $0x18] sm:$0xff] (!%p252_p9) }
  0x16   : > { %374 = vperm.xlu0 (!%p252_p9), %1158, %v319_v5   ;;  %v334_v47 = vld [vmem:[#allocation2] sm:$0x1] (!%p252_p9)  ;;  %v309_v7 = vld [vmem:[%s1567_s1 + $0x18] sm:$0xff] (!%p252_p9) }
  0x17   : > { %384 = vperm.xlu1 (!%p252_p9), %1159, %v321_v6   ;;  %v307_v6 = vld [vmem:[%s1567_s1 + $0x8] sm:$0xff] (!%p252_p9) }
  0x18   : > { %s293_s17 = scalar_select %p292_p10, %s1320_s14, 37 }
  0x19   : > { %s998_s25 = sshll.u32 (%p1309_p5), %s1292_s6, 1 }
  0x1a   : > { %s952_s22 = sshll.u32 %s293_s17, 3  ;;  %389 = vperm.xlu0 %1158, %v322_v17   ;;  %s876_s30 = ssub.s32 (%p1309_p5), 3, %s998_s25 }
  0x1b   : > { %s1346_s15 = scalar_lea.vmem %s1566_s0, %s952_s22  ;;  %394 = vperm.xlu1 %1159, %v323_v18   ;;  %s950_s22 = sshll.u32 %s284_s21, 1 }
  0x1c   : > { %v351_v8 = vld [vmem:[%s1346_s15 + $0x80] sm:$0xff]  ;;  %v352_v9 = vld [vmem:[%s1346_s15 + $0x88] sm:$0xff]  ;;  %v353_v13 = vld [vmem:[%s1346_s15 + $0x90] sm:$0xff]  ;;  %s286_s23 = scalar_lea.vmem [#allocation3], %s950_s22  ;;  %p877_p11 = scmp.lt.s32.totalorder (%p1309_p5), %s876_s30, 2 }
  0x1d   : > { %v335_v10 = vld [vmem:[%s1346_s15] sm:$0xff]  ;;  %v1053_v11 = vpack.c.bf16 %v352_v9, %v351_v8  ;;  %v336_v12 = vld [vmem:[%s1346_s15 + $0x8] sm:$0xff]  ;;  %v354_v14 = vld [vmem:[%s1346_s15 + $0x98] sm:$0xff] }
  0x1e   : > { %v1056_v15 = vpack.c.bf16 %v336_v12, %v335_v10  ;;  %v1059_v16 = vpack.c.bf16 %v354_v14, %v353_v13  ;;  %v337_v19 = vld [vmem:[%s1346_s15 + $0x10] sm:$0xff]  ;;  %v338_v20 = vld [vmem:[%s1346_s15 + $0x18] sm:$0xff]  ;;  %v355_v21 = vld [vmem:[%s1346_s15 + $0xa0] sm:$0xff]  ;;  %399 = vperm.xlu0 %1158, %v324_v23   ;;  %v1225_v12 = vmov 0.0  }
  0x1f   : > { %1055 = vmatprep.subr.msk.bf16.mxu0 %vm1350_vm1, %v1053_v11  ;;  %v356_v22 = vld [vmem:[%s1346_s15 + $0xa8] sm:$0xff]  ;;  %v1062_v25 = vpack.c.bf16 %v338_v20, %v337_v19  ;;  %404 = vperm.xlu1 %1159, %v325_v24   ;;  %v339_v29 = vld [vmem:[%s1346_s15 + $0x20] sm:$0xff]  ;;  %v357_v31 = vld [vmem:[%s1346_s15 + $0xb0] sm:$0xff] }
  0x20   : > { %1058 = vmatpush3.bf16.xpose.msk.msra.mxu0 %vm1350_vm1, %v1056_v15  ;;  %v1065_v26 = vpack.c.bf16 %v356_v22, %v355_v21  ;;  %v340_v30 = vld [vmem:[%s1346_s15 + $0x28] sm:$0xff]  ;;  %v358_v32 = vld [vmem:[%s1346_s15 + $0xb8] sm:$0xff]  ;;  %v341_v39 = vld [vmem:[%s1346_s15 + $0x30] sm:$0xff]  ;;  %754 = vmatprep.mubr.f32.mxu1 %v1225_v12 }
  0x21   : > { %1061 = vmatprep.subr.msk.bf16.mxu0 %vm1350_vm1, %v1059_v16  ;;  %v1068_v35 = vpack.c.bf16 %v340_v30, %v339_v29  ;;  %v1071_v36 = vpack.c.bf16 %v358_v32, %v357_v31  ;;  %v342_v40 = vld [vmem:[%s1346_s15 + $0x38] sm:$0xff]  ;;  %v359_v41 = vld [vmem:[%s1346_s15 + $0xc0] sm:$0xff]  ;;  %v360_v42 = vld [vmem:[%s1346_s15 + $0xc8] sm:$0xff] }
  0x22   : > { %659 = vperm.xlu0 %1158, %v326_v27   ;;  %v1074_v45 = vpack.c.bf16 %v342_v40, %v341_v39  ;;  %v1077_v46 = vpack.c.bf16 %v360_v42, %v359_v41  ;;  %v343_v48 = vld [vmem:[%s1346_s15 + $0x40] sm:$0xff]  ;;  %v344_v49 = vld [vmem:[%s1346_s15 + $0x48] sm:$0xff]  ;;  %v361_v50 = vld [vmem:[%s1346_s15 + $0xd0] sm:$0xff] }
  0x23   : > { %664 = vperm.xlu1 %1159, %v327_v28   ;;  %v362_v51 = vld [vmem:[%s1346_s15 + $0xd8] sm:$0xff]  ;;  %v1080_v52 = vpack.c.bf16 %v344_v49, %v343_v48  ;;  %v345_v54 = vld [vmem:[%s1346_s15 + $0x50] sm:$0xff]  ;;  %v363_v56 = vld [vmem:[%s1346_s15 + $0xe0] sm:$0xff] }
  0x24   : > { %v1083_v53 = vpack.c.bf16 %v362_v51, %v361_v50  ;;  %v346_v55 = vld [vmem:[%s1346_s15 + $0x58] sm:$0xff]  ;;  %v364_v57 = vld [vmem:[%s1346_s15 + $0xe8] sm:$0xff]  ;;  %v347_v60 = vld [vmem:[%s1346_s15 + $0x60] sm:$0xff] }
  0x25   : > { %v1086_v58 = vpack.c.bf16 %v346_v55, %v345_v54  ;;  %v1089_v59 = vpack.c.bf16 %v364_v57, %v363_v56  ;;  %v348_v61 = vld [vmem:[%s1346_s15 + $0x68] sm:$0xff]  ;;  %v365_v62 = vld [vmem:[%s1346_s15 + $0xf0] sm:$0xff]  ;;  %v366_v63 = vld [vmem:[%s1346_s15 + $0xf8] sm:$0xff] }
  0x26   : > { %669 = vperm.xlu0 %1158, %v328_v33   ;;  %v1092_v0 = vpack.c.bf16 %v348_v61, %v347_v60  ;;  %v1095_v2 = vpack.c.bf16 %v366_v63, %v365_v62  ;;  %v349_v3 = vld [vmem:[%s1346_s15 + $0x70] sm:$0xff]  ;;  %v350_v4 = vld [vmem:[%s1346_s15 + $0x78] sm:$0xff]  ;;  %v311_v9 = vld [vmem:[%s1567_s1 + $0x28] sm:$0xff] }
  0x27   : > { %674 = vperm.xlu1 %1159, %v329_v34   ;;  %v1098_v5 = vpack.c.bf16 %v350_v4, %v349_v3  ;;  %v308_v8 = vld [vmem:[%s1567_s1 + $0x10] sm:$0xff]  ;;  %v313_v11 = vld [vmem:[%s1567_s1 + $0x38] sm:$0xff] }
  0x28   : > { %1064 = vmatpush3.bf16.xpose.msk.msra.mxu0 %vm1350_vm1, %v1062_v25  ;;  %v312_v10 = vld [vmem:[%s1567_s1 + $0x30] sm:$0xff] }
  0x29   : > { %1067 = vmatprep.subr.msk.bf16.mxu0 %vm1350_vm1, %v1065_v26 }
  0x2a   : > { %789 = vperm.xlu0 %1158, %v330_v37  }
  0x2b   : > { %794 = vperm.xlu1 %1159, %v331_v38  }
  0x2e   : > { %799 = vperm.xlu0 %1158, %v332_v43  }
  0x2f   : > { %804 = vperm.xlu1 %1159, %v333_v44  }
  0x30   : > { %1070 = vmatpush3.bf16.xpose.msk.msra.mxu0 %vm1350_vm1, %v1068_v35 }
  0x31   : > { %1073 = vmatprep.subr.msk.bf16.mxu0 %vm1350_vm1, %v1071_v36 }
  0x32   : > { %835 = vperm.xlu0 %1158, %v334_v47  }
  0x38   : > { %1076 = vmatpush3.bf16.xpose.msk.msra.mxu0 %vm1350_vm1, %v1074_v45 }
  0x39   : > { %1079 = vmatprep.subr.msk.bf16.mxu0 %vm1350_vm1, %v1077_v46 }
  0x40   : > { %1082 = vmatpush3.bf16.xpose.msk.msra.mxu0 %vm1350_vm1, %v1080_v52 }
  0x41   : > { %1085 = vmatprep.subr.msk.bf16.mxu0 %vm1350_vm1, %v1083_v53 }
  0x48   : > { %1088 = vmatpush3.bf16.xpose.msk.msra.mxu0 %vm1350_vm1, %v1086_v58 }
  0x49   : > { %1091 = vmatprep.subr.msk.bf16.mxu0 %vm1350_vm1, %v1089_v59 }
  0x50   : > { %1094 = vmatpush3.bf16.xpose.msk.msra.mxu0 %vm1350_vm1, %v1092_v0 }
  0x51   : > { %1097 = vmatprep.subr.msk.bf16.mxu0 %vm1350_vm1, %v1095_v2 }
  0x58   : > { %1100 = vmatpush3.bf16.xpose.msk.msra.mxu0 %vm1350_vm1, %v1098_v5 }
  0x5f   : > { %1038 = vmatmul.mubr.msk.f32.vlgmr.msra.gmra.mrb[0].mxu0 %vm407_vm0, %v1325_v1  ;;  %v310_v1 = vld [vmem:[%s1567_s1 + $0x20] sm:$0xff] }
  0x60   : > { %1039 = vmatprep.mubr.msk.f32.mxu0 %vm407_vm0, %v307_v6 }
  0x63   : > { %1040 = vmatmul.mubr.msk.f32.gmra.mrb[2].mxu0 %vm407_vm0, %v307_v6 }
  0x64   : > { %1041 = vmatprep.mubr.msk.f32.mxu0 %vm407_vm0, %v308_v8 }
  0x67   : > { %1042 = vmatmul.mubr.msk.f32.gmra.mrb[4].mxu0 %vm407_vm0, %v308_v8 }
  0x68   : > { %1043 = vmatprep.mubr.msk.f32.mxu0 %vm407_vm0, %v309_v7 }
  0x6b   : > { %1044 = vmatmul.mubr.msk.f32.gmra.mrb[6].mxu0 %vm407_vm0, %v309_v7 }
  0x6c   : > { %1045 = vmatprep.mubr.msk.f32.mxu0 %vm407_vm0, %v310_v1 }
  0x6f   : > { %1046 = vmatmul.mubr.msk.f32.gmra.mrb[8].mxu0 %vm407_vm0, %v310_v1 }
  0x70   : > { %1047 = vmatprep.mubr.msk.f32.mxu0 %vm407_vm0, %v311_v9 }
  0x73   : > { %1048 = vmatmul.mubr.msk.f32.gmra.mrb[10].mxu0 %vm407_vm0, %v311_v9 }
  0x74   : > { %1049 = vmatprep.mubr.msk.f32.mxu0 %vm407_vm0, %v312_v10 }
  0x77   : > { %1050 = vmatmul.mubr.msk.f32.gmra.mrb[12].mxu0 %vm407_vm0, %v312_v10 }
  0x78   : > { %1051 = vmatprep.mubr.msk.f32.mxu0 %vm407_vm0, %v313_v11 }
  0x7b   : > { %1052 = vmatmul.mubr.msk.f32.gmra.mrb[14].mxu0 %vm407_vm0, %v313_v11 }
  0x91   : > { %v370_v13 = vpop.permute.xlu0 %369 }
  0x92   : > { %v380_v22 = vpop.permute.xlu1 %379 }
  0x95   : > { %v375_v17 = vpop.permute.xlu0 %374 }
  0x96   : > { %v385_v33 = vpop.permute.xlu1 %384 }
  0x99   : > { %v390_v46 = vpop.permute.xlu0 %389 }
  0x9a   : > { %v395_v49 = vpop.permute.xlu1 %394 }
  0x9d   : > { %v400_v62 = vpop.permute.xlu0 %399 }
  0x9e   : > { %v405_v2 = vpop.permute.xlu1 %404 }
 0x132   : > { %v594_v14 = vpop.f32.mrb[0].mxu0 }
 0x133   : > { %v596_v15 = vpop.f32.mrb[1].mxu0  ;;  %v595_v16 = vadd.f32 %v594_v14, %v370_v13  ;;  %v314_v14 = vld [vmem:[%s1569_s3] sm:$0xff] }
 0x134   : > { %v597_v18 = vadd.f32 %v596_v15, %v370_v13  ;;  %v315_v15 = vld [vmem:[%s1569_s3 + $0x8] sm:$0xff] }
 0x135   : > { %v641_v24 = vmax.f32 %v595_v16, 0.0  ;;  %v316_v16 = vld [vmem:[%s1569_s3 + $0x10] sm:$0xff] }
 0x136   : > { %v600_v19 = vpop.f32.mrb[2].mxu0  ;;  %v642_v26 = vmax.f32 %v597_v18, 0.0  ;;  %v660_v18 = vpop.permute.xlu0 %659 }
 0x137   : > { %v601_v20 = vadd.f32 %v600_v19, %v375_v17  ;;  %v602_v21 = vpop.f32.mrb[3].mxu0  ;;  %v665_v19 = vpop.permute.xlu1 %664 }
 0x138   : > { %v603_v23 = vadd.f32 %v602_v21, %v375_v17  ;;  %v317_v17 = vld [vmem:[%s1569_s3 + $0x18] sm:$0xff] }
 0x139   : > { %v643_v25 = vmax.f32 %v601_v20, 0.0 }
 0x13a   : > { %v644_v27 = vmax.f32 %v603_v23, 0.0  ;;  %v606_v28 = vpop.f32.mrb[4].mxu0  ;;  %v670_v20 = vpop.permute.xlu0 %669 }
 0x13b   : > { %v608_v29 = vpop.f32.mrb[5].mxu0  ;;  %v1103_v30 = vpack.c.bf16 %v643_v25, %v641_v24  ;;  %v607_v32 = vadd.f32 %v606_v28, %v380_v22  ;;  %v675_v24 = vpop.permute.xlu1 %674 }
 0x13c   : > { %v1101_v31 = vpack.c.bf16 %v644_v27, %v642_v26  ;;  %v609_v34 = vadd.f32 %v608_v29, %v380_v22 }
 0x13d   : > { %v645_v39 = vmax.f32 %v607_v32, 0.0 }
 0x13e   : > { %v612_v35 = vpop.f32.mrb[6].mxu0  ;;  %1102 = vmatprep.subr.bf16.mxu1 %v1101_v31  ;;  %v646_v41 = vmax.f32 %v609_v34, 0.0 }
 0x13f   : > { %v613_v36 = vadd.f32 %v612_v35, %v385_v33  ;;  %v614_v37 = vpop.f32.mrb[7].mxu0  ;;  %1104 = vmatpush1.bf16.msra.mxu1 %v1103_v30  ;;  %v790_v30 = vpop.permute.xlu0 %789 }
 0x140   : > { %v615_v38 = vadd.f32 %v614_v37, %v385_v33  ;;  %v795_v33 = vpop.permute.xlu1 %794 }
 0x141   : > { %v647_v40 = vmax.f32 %v613_v36, 0.0 }
 0x142   : > { %v648_v42 = vmax.f32 %v615_v38, 0.0  ;;  %v618_v43 = vpop.f32.mrb[8].mxu0 }
 0x143   : > { %v1107_v44 = vpack.c.bf16 %v647_v40, %v645_v39  ;;  %v620_v45 = vpop.f32.mrb[9].mxu0  ;;  %v619_v48 = vadd.f32 %v618_v43, %v390_v46 }
 0x144   : > { %v1105_v47 = vpack.c.bf16 %v648_v42, %v646_v41  ;;  %v621_v50 = vadd.f32 %v620_v45, %v390_v46  ;;  %v800_v45 = vpop.permute.xlu0 %799 }
 0x145   : > { %v649_v55 = vmax.f32 %v619_v48, 0.0 }
 0x146   : > { %v624_v51 = vpop.f32.mrb[10].mxu0  ;;  %1106 = vmatprep.subr.bf16.mxu1 %v1105_v47  ;;  %v650_v57 = vmax.f32 %v621_v50, 0.0 }
 0x147   : > { %v625_v52 = vadd.f32 %v624_v51, %v395_v49  ;;  %v626_v53 = vpop.f32.mrb[11].mxu0  ;;  %1108 = vmatpush1.bf16.msra.mxu1 %v1107_v44 }
 0x148   : > { %v627_v54 = vadd.f32 %v626_v53, %v395_v49 }
 0x149   : > { %v651_v56 = vmax.f32 %v625_v52, 0.0 }
 0x14a   : > { %v652_v58 = vmax.f32 %v627_v54, 0.0  ;;  %v630_v59 = vpop.f32.mrb[12].mxu0 }
 0x14b   : > { %v1111_v60 = vpack.c.bf16 %v651_v56, %v649_v55  ;;  %v632_v61 = vpop.f32.mrb[13].mxu0  ;;  %v631_v0 = vadd.f32 %v630_v59, %v400_v62  ;;  %v805_v56 = vpop.permute.xlu1 %804 }
 0x14c   : > { %v1109_v63 = vpack.c.bf16 %v652_v58, %v650_v57  ;;  %v633_v3 = vadd.f32 %v632_v61, %v400_v62  ;;  %v838_v61 = vlaneseq }
 0x14d   : > { %v653_v7 = vmax.f32 %v631_v0, 0.0 }
 0x14e   : > { %v636_v4 = vpop.f32.mrb[14].mxu0  ;;  %1110 = vmatprep.subr.bf16.mxu1 %v1109_v63  ;;  %v654_v9 = vmax.f32 %v633_v3, 0.0  ;;  %v839_v3 = vshrl.u32 %v838_v61, 7  ;;  %vm864_vm3 = vcmp.lt.s32.totalorder %v838_v61, 256 }
 0x14f   : > { %v637_v5 = vadd.f32 %v636_v4, %v405_v2  ;;  %v638_v6 = vpop.f32.mrb[15].mxu0  ;;  %1112 = vmatpush1.bf16.msra.mxu1 %v1111_v60 }
 0x150   : > { %v639_v8 = vadd.f32 %v638_v6, %v405_v2 }
 0x151   : > { %v655_v1 = vmax.f32 %v637_v5, 0.0 }
 0x152   : > { %v656_v10 = vmax.f32 %v639_v8, 0.0  ;;  %v1226_v8 = vmov 1966171168  }
 0x153   : > { %v1115_v11 = vpack.c.bf16 %v655_v1, %v653_v7  ;;  %v848_v7 = vunpack.c.l.s4 %v1226_v8 }
 0x154   : > { %v1113_v13 = vpack.c.bf16 %v656_v10, %v654_v9  ;;  %v840_v9 = vsub.s32 0, %v839_v3 }
 0x156   : > { %1114 = vmatprep.subr.bf16.mxu1 %v1113_v13 }
 0x157   : > { %1116 = vmatpush1.bf16.msra.mxu1 %v1115_v11  ;;  %v836_v11 = vpop.permute.xlu0 %835 }
 0x15a   : > { %993 = vmatmul.mubr.msk.f32.vlgmr.msra.gmra.mrb[0].mxu1 %vm677_vm2, %v314_v14 }
 0x15b   : > { %760 = vmatprep.mubr.f32.mxu1 %v1225_v12 }
 0x15e   : > { %994 = vmatmul.mubr.msk.f32.gmra.mrb[2].mxu1 %vm677_vm2, %v315_v15  ;;  %v849_v15 = vunpack.c.0.s8 %v848_v7 }
 0x15f   : > { %766 = vmatprep.mubr.f32.mxu1 %v1225_v12 }
 0x162   : > { %995 = vmatmul.mubr.msk.f32.gmra.mrb[4].mxu1 %vm677_vm2, %v316_v16 }
 0x163   : > { %772 = vmatprep.mubr.f32.mxu1 %v1225_v12 }
 0x166   : > { %996 = vmatmul.mubr.msk.f32.gmra.mrb[6].mxu1 %vm677_vm2, %v317_v17  ;;  %v841_v17 = vrot.slane %v836_v11, %v840_v9 }
 0x22d   : > { %v756_v21 = vpop.f32.mrb[0].mxu1 }
 0x22e   : > { %v757_v22 = vadd.f32 %v756_v21, %v660_v18  ;;  %v758_v23 = vpop.f32.mrb[1].mxu1  ;;  %v852_v21 = vsub.s32 %v849_v15, %v839_v3 }
 0x22f   : > { %v759_v25 = vadd.f32 %v758_v23, %v660_v18 }
 0x230   : > { %v779_v27 = vmax.f32 %v757_v22, 0.0 }
 0x231   : > { %v762_v26 = vpop.f32.mrb[2].mxu1  ;;  %v780_v12 = vmax.f32 %v759_v25, 0.0 }
 0x232   : > { %v763_v28 = vadd.f32 %v762_v26, %v665_v19  ;;  %v764_v29 = vpop.f32.mrb[3].mxu1  ;;  %v807_v36 = vmul.f32 %v790_v30, %v779_v27 }
 0x233   : > { %v765_v31 = vadd.f32 %v764_v29, %v665_v19  ;;  %v808_v40 = vmul.f32 %v790_v30, %v780_v12 }
 0x234   : > { %v781_v32 = vmax.f32 %v763_v28, 0.0 }
 0x235   : > { %v782_v34 = vmax.f32 %v765_v31, 0.0  ;;  %v768_v35 = vpop.f32.mrb[4].mxu1 }
 0x236   : > { %v809_v37 = vmul.f32 %v795_v33, %v781_v32  ;;  %v769_v38 = vadd.f32 %v768_v35, %v670_v20  ;;  %v770_v39 = vpop.f32.mrb[5].mxu1 }
 0x237   : > { %v810_v41 = vmul.f32 %v795_v33, %v782_v34  ;;  %v771_v42 = vadd.f32 %v770_v39, %v670_v20 }
 0x238   : > { %v815_v43 = vadd.f32 %v809_v37, %v807_v36  ;;  %v783_v44 = vmax.f32 %v769_v38, 0.0 }
 0x239   : > { %v824_v46 = vadd.f32 %v810_v41, %v808_v40  ;;  %v784_v47 = vmax.f32 %v771_v42, 0.0  ;;  %v774_v48 = vpop.f32.mrb[6].mxu1 }
 0x23a   : > { %v811_v49 = vmul.f32 %v800_v45, %v783_v44  ;;  %v775_v50 = vadd.f32 %v774_v48, %v675_v24  ;;  %v776_v51 = vpop.f32.mrb[7].mxu1 }
 0x23b   : > { %v812_v52 = vmul.f32 %v800_v45, %v784_v47  ;;  %v777_v53 = vadd.f32 %v776_v51, %v675_v24 }
 0x23c   : > { %v816_v54 = vadd.f32 %v815_v43, %v811_v49  ;;  %v785_v55 = vmax.f32 %v775_v50, 0.0 }
 0x23d   : > { %v825_v57 = vadd.f32 %v824_v46, %v812_v52  ;;  %v786_v58 = vmax.f32 %v777_v53, 0.0 }
 0x23e   : > { %v813_v59 = vmul.f32 %v805_v56, %v785_v55 }
 0x23f   : > { %v814_v60 = vmul.f32 %v805_v56, %v786_v58 }
 0x240   : > { %v817_v62 = vadd.f32 %v816_v54, %v813_v59 }
 0x241   : > { %v826_v63 = vadd.f32 %v825_v57, %v814_v60 }
 0x242   : > { %v818_v0 = vrot.slane %v817_v62, 4 }
 0x243   : > { %v827_v2 = vrot.slane %v826_v63, 4 }
 0x244   : > { %v819_v4 = vadd.f32 %v818_v0, %v817_v62 }
 0x245   : > { %v828_v5 = vadd.f32 %v827_v2, %v826_v63 }
 0x246   : > { %v820_v6 = vrot.slane %v819_v4, 2 }
 0x247   : > { %v829_v1 = vrot.slane %v828_v5, 2 }
 0x248   : > { %v821_v10 = vadd.f32 %v820_v6, %v819_v4 }
 0x249   : > { %v830_v13 = vadd.f32 %v829_v1, %v828_v5 }
 0x24a   : > { %v822_v14 = vrot.slane %v821_v10, 1 }
 0x24b   : > { %v831_v16 = vrot.slane %v830_v13, 1 }
 0x24c   : > { %v823_v18 = vadd.f32 %v822_v14, %v821_v10 }
 0x24d   : > { %v832_v19 = vadd.f32 %v831_v16, %v830_v13 }
 0x24e   : > { %v842_v20 = vadd.f32 %v841_v17, %v823_v18 }
 0x24f   : > { %v843_v22 = vadd.f32 %v841_v17, %v832_v19 }
 0x251   : > { %v846_v23 = vcombine.low %v842_v20, %v843_v22  ;;  %874 = sbr.rel (!%p1309_p5) target bundleno = 627 (0x273), region = 52 }
 0x253   : > { %v853_v24 = vrot.slane %v846_v23, %v852_v21 }
 0x255   : > { %v860_v25 = vrot.slane %v853_v24, %v852_v21 }
 0x257   : > { %866 = vst.msk [vmem:[%s286_s23] sm:$0x3] %vm864_vm3, %v860_v25 }
 0x258   : > { %s1583_s30 = smov (!%p877_p11, %s876_s30), 2 }
 0x259   : > { %s1517_s9 = sshll.u32 %s1583_s30, 4 }
 0x25a   : > { %s881_s10 = ssub.s32 32, %s1517_s9 }
 0x25b   : > { %882 = vsyncadd %s1512_s24, %s881_s10  ;;  %p1000_p12 = scmp.ne.s32.totalorder %s1517_s9, 0  ;;  %s1526_s12 = scalar_lea.hbm %s1573_s7, %s1320_s14 }
 0x25c   : > { %s887_s15 = sshll.u32 %s286_s23, 4  ;;  %s1227_s18 = smov [#allocation3]   ;;  %s888_s15 = int_to_ptr.vmem [resolvable:$true] %s887_s15 }
 0x25d   : > { %s1160_s6 = scalar_lea.vmem %s888_s15, %s1517_s9  ;;  %s1164_s19 = sshll.u32 %s1227_s18, 4  ;;  %s1165_s19 = int_to_ptr.vmem [resolvable:$false] %s1164_s19 }
 0x25e   : > { %p1161_p13 = scmp.ne.s32.totalorder %s888_s15, %s1160_s6  ;;  %s1166_s20 = scalar_lea.vmem %s1165_s19, 64 }
 0x25f   : > { %p1167_p2 = scmp.lt.s32.totalorder %s888_s15, %s1165_s19  ;;  %p1168_p3 = scmp.lt.s32.totalorder %s1166_s20, %s1160_s6 }
 0x260   : > { %p1162_p0 = pnand %p1161_p13, %p1000_p12 }
 0x261   : > { %p1169_p4 = por %p1168_p3, %p1167_p2 }
 0x262   : > { %p1163_p1 = pneg %p1162_p0 }
 0x264   : > { %p1170_p5 = pnand %p1169_p4, %p1163_p1 }
 0x266   : > { %1173 = shalt.err (!%p1170_p5)
}
 0x267   : > { %s1174_s14 = scalar_lea.hbm %s1526_s12, %s1517_s9  ;;  %s1178_s23 = scalar_lea.hbm %s1573_s7, 48 }
 0x268   : > { %p1175_p7 = scmp.ne.s32.totalorder %s1526_s12, %s1174_s14  ;;  %p1179_p10 = scmp.lt.u32.totalorder %s1526_s12, %s1573_s7 }
 0x269   : > { %p1180_p11 = scmp.lt.u32.totalorder %s1178_s23, %s1174_s14  ;;  %p1182_p0 = scmp.lt.u32.totalorder %s1174_s14, %s1526_s12 }
 0x26a   : > { %p1176_p8 = pnand %p1175_p7, %p1000_p12 }
 0x26b   : > { %p1181_p13 = por %p1180_p11, %p1179_p10 }
 0x26c   : > { %p1177_p9 = pneg %p1176_p8 }
 0x26d   : > { %p1183_p1 = por %p1182_p0, %p1181_p13 }
 0x26f   : > { %p1184_p2 = pnand %p1183_p1, %p1177_p9 }
 0x271   : > { %1187 = shalt.err (!%p1184_p2)
}
 0x272   : > { %890 = dma.vmem_to_hbm [thread:$0]  (%p1000_p12), %s888_s15, %s1517_s9, %s1526_s12, %s1512_s24  }
 0x273 PF: > { %p1122_p3 = scmp.ge.s32.totalorder %s1222_s29, 2  ;;  %s899_s10 = sand.u32 1, %s1210_s26  }
 0x274   : > { %s900_s16 = scalar_lea.sflag [#allocation4], %s899_s10 }
 0x275   : > { %p1119_p4 = pnand %p1122_p3, %p1313_p6 }
 0x277   : > { %1205 = dma.done.wait (!%p1119_p4), %s900_s16, 32  }
 0x278   : > { %1207 = vsyncadd (!%p1119_p4), %s900_s16, 4294967264  ;;  %p19_p5 = scmp.ge.s32.totalorder %s1296_s8, 4   ;;  %s1578_s26 = smov %s1214_s27 }
 0x279   : > { %s1579_s27 = smov %s1218_s28  ;;  %s1580_s28 = smov %s1307_s11 }
 0x27a   : > { %s1581_s29 = smov %s1296_s8  ;;  %21 = sbr.rel (!%p19_p5) target bundleno = 6 (0x6), region = 83 }
 0x281   :  { %905 = vsyncpa [#allocation4], 1 }
 0x282   :  { %907 = vsyncpa [#allocation4 + $0x1], 1 }

</bundles_post_ra>
